<compile_context>
chip_gen: v7x
topology: tpu7x:2x2x1
jax: 0.10.0
libtpu: 0.0.40
codegen_flags: <defaults>
</compile_context>

<pallas_src>
import functools

import jax
import jax.numpy as jnp
from jax.experimental import pallas as pl
from jax.experimental.pallas import tpu as pltpu


def _fed_dis_partials_kernel(inv_b, seg_has_both_channels,
                             seg_ref, tgt_ref, x_ref, img_ref, za_ref, zp_ref,
                             out_ref,
                             inter_acc, psum_acc, tsum_acc, l1_acc, lol_acc):
    """Reductions of FedDisLoss over a (n_split, steps) grid.

    Grid axis 0 ("parallel") splits the spatial axis across TensorCores
    (useful on v7x); axis 1 ("arbitrary") is the sequential reduction over the
    core's slice.  Each p writes one (1, 8, 128) output block whose lanes 0..4
    of row 0 pack [intersection, sum(pred), sum(target), sum|x - img|, mean_cos].
    """
    f32 = jnp.float32
    p = pl.program_id(0)
    s = pl.program_id(1)

    # ---- init accumulators at the start of each core's reduction ----
    @pl.when(s == 0)
    def _init():
        inter_acc[...] = jnp.zeros_like(inter_acc)
        psum_acc[...] = jnp.zeros_like(psum_acc)
        tsum_acc[...] = jnp.zeros_like(tsum_acc)
        l1_acc[...] = jnp.zeros_like(l1_acc)
        lol_acc[...] = jnp.zeros_like(lol_acc)

    # ---- cosine-similarity term: tiny (B, fz) tensors, computed once ----
    # Only the p == 0 slice contributes; the wrapper sums the per-core rows.
    @pl.when(jnp.logical_and(s == 0, p == 0))
    def _cosine():
        za = za_ref[...].astype(f32)                        # (B, fz)
        zp = zp_ref[...].astype(f32)
        dot = jnp.sum(za * zp, axis=1, keepdims=True)       # (B, 1)
        na = jnp.maximum(jnp.sqrt(jnp.sum(za * za, axis=1, keepdims=True)), 1e-8)
        nb = jnp.maximum(jnp.sqrt(jnp.sum(zp * zp, axis=1, keepdims=True)), 1e-8)
        cos = dot / (na * nb)                 # torch CosineSimilarity eps rule
        lol_acc[...] = jnp.sum(cos, axis=0, keepdims=True) * inv_b

    # ---- dice partial sums (normally only channel 1 of seg is DMA'd) ----
    if seg_has_both_channels:                 # fallback: hw not 128-aligned
        pred = seg_ref[:, 1, :].astype(f32)                 # (B, tile_hw)
    else:
        pred = seg_ref[...].astype(f32)                     # (B, tile_hw)
    tgt = tgt_ref[...].astype(f32)                          # (B, tile_hw)
    # TODO(synk): lane-dense (8,128) partial accumulators + folding the B-row
    #             dice tensors into more sublanes would cut the per-step XLU
    #             collapse; kernel stays HBM-bound so scalars are kept for now.
    inter_acc[...] += jnp.sum(pred * tgt, keepdims=True)
    psum_acc[...] += jnp.sum(pred, keepdims=True)
    tsum_acc[...] += jnp.sum(tgt, keepdims=True)

    # ---- L1 reconstruction partial sum (batch*channel folded into sublanes) ----
    diff = x_ref[...].astype(f32) - img_ref[...].astype(f32)
    l1_acc[...] += jnp.sum(jnp.abs(diff), keepdims=True)

    # ---- emit this core's partial sums on its last reduction step ----
    @pl.when(s == pl.num_programs(1) - 1)
    def _finalize():
        lane = jax.lax.broadcasted_iota(jnp.int32, out_ref.shape, 2)
        row = jnp.zeros(out_ref.shape, f32)
        row = jnp.where(lane == 0, inter_acc[...], row)
        row = jnp.where(lane == 1, psum_acc[...], row)
        row = jnp.where(lane == 2, tsum_acc[...], row)
        row = jnp.where(lane == 3, l1_acc[...], row)
        row = jnp.where(lane == 4, lol_acc[...], row)
        out_ref[...] = row


def _choose_tiling(hw, max_row_bytes, n_split, max_tile_bytes, steps_override):
    """Return (n_split, steps_per_split, lane_tile, seg_needs_both_channels)."""
    if hw % 128 != 0:
        # Lane-aligned partial tiles of the channel-1-only seg view are not
        # expressible; fall back to one full-extent step (both seg channels).
        return 1, 1, hw, True
    n128 = hw // 128
    n_split = max(1, int(n_split))
    if n128 % n_split != 0:
        n_split = 1
    per_split = n128 // n_split                  # 128-lane chunks per core
    if steps_override is not None:
        steps = int(steps_override)
        assert per_split % steps == 0, (
            "grid_steps must divide hw / (128 * num_core_splits)")
        return n_split, steps, (per_split // steps) * 128, False
    # Largest lane tile (multiple of 128, divisor of per_split) whose biggest
    # input stream stays under ~max_tile_bytes: fits double-buffered VMEM on
    # 64 MiB v7x while amortizing the ~0.35 us/step pipeline overhead.
    budget = max(1, int(max_tile_bytes) // (128 * max_row_bytes))
    k = 1
    for cand in range(min(per_split, budget), 0, -1):
        if per_split % cand == 0:
            k = cand
            break
    return n_split, per_split // k, k * 128, False


def fed_dis_loss(y_true, seg, x_, z_s, z_a, z_s_shift, z_s_proj, images, *,
                 train=True, alpha=0.2, beta=0.5, dice_w=5.0,
                 num_core_splits=1, grid_steps=None,
                 max_tile_bytes=2 * 1024 * 1024):
    """JAX/Pallas equivalent of FedDisLoss(train).forward(...).

    Feed the large tensors (y_true, seg, x_, images) in bf16 to halve HBM
    traffic; the kernel upcasts per tile and accumulates in f32.  On v7x set
    num_core_splits=2 to split the bandwidth-bound reduction across both TCs.
    """
    del z_s, z_s_shift, beta                    # unused by the torch forward

    B = seg.shape[0]
    assert seg.shape[1] == 2, "seg must have 2 channels"
    hw = int(y_true.size) // B                  # per-batch spatial size
    n_reco = int(x_.size)
    rows_r = n_reco // hw                       # B*C folded into sublanes
    fz = int(z_a.size) // B                     # flattened latent size
    assert rows_r * hw == n_reco and int(seg.size) == 2 * B * hw

    # Pure reshapes only -- no HBM copies in the wrapper.
    tgt2 = y_true.reshape(B, hw)
    x2 = x_.reshape(rows_r, hw)
    img2 = images.reshape(rows_r, hw)
    za2 = z_a.reshape(B, fz)
    zp2 = z_s_proj.reshape(B, fz)

    max_row_bytes = max(B * seg.dtype.itemsize, B * y_true.dtype.itemsize,
                        rows_r * x_.dtype.itemsize,
                        rows_r * images.dtype.itemsize)
    n_split, steps, tw_hw, seg_both = _choose_tiling(
        hw, max_row_bytes, num_core_splits, max_tile_bytes, grid_steps)

    if seg_both:
        seg_in = seg.reshape(B, 2, hw)
        seg_spec = pl.BlockSpec((B, 2, hw), lambda p, s: (0, 0, 0))
    else:
        # (B, 2*hw) view; the index_map jumps straight to the channel-1 half,
        # so channel 0 is never DMA'd.
        seg_in = seg.reshape(B, 2 * hw)
        ch1_block0 = hw // tw_hw
        seg_spec = pl.BlockSpec(
            (B, tw_hw), lambda p, s: (0, ch1_block0 + p * steps + s))

    spatial = lambda p, s: (0, p * steps + s)
    in_specs = [
        seg_spec,                                           # seg channel 1
        pl.BlockSpec((B, tw_hw), spatial),                  # y_true
        pl.BlockSpec((rows_r, tw_hw), spatial),             # x_
        pl.BlockSpec((rows_r, tw_hw), spatial),             # images
        pl.BlockSpec((B, fz), lambda p, s: (0, 0)),         # z_a (resident)
        pl.BlockSpec((B, fz), lambda p, s: (0, 0)),         # z_s_proj
    ]
    out_spec = pl.BlockSpec((1, 8, 128), lambda p, s: (p, 0, 0))

    bytes_in = (B * hw * seg.dtype.itemsize * (2 if seg_both else 1)
                + int(tgt2.size) * tgt2.dtype.itemsize
                + int(x2.size) * x2.dtype.itemsize
                + int(img2.size) * img2.dtype.itemsize
                + int(za2.size) * za2.dtype.itemsize
                + int(zp2.size) * zp2.dtype.itemsize)
    cost = pl.CostEstimate(
        flops=4 * int(tgt2.size) + 3 * int(x2.size) + 8 * int(za2.size),
        transcendentals=2 * B,
        bytes_accessed=int(bytes_in) + n_split * 8 * 128 * 4)

    kernel = functools.partial(
        _fed_dis_partials_kernel, 1.0 / float(B), bool(seg_both))

    out = pl.pallas_call(
        kernel,
        out_shape=jax.ShapeDtypeStruct((n_split, 8, 128), jnp.float32),
        grid_spec=pltpu.PrefetchScalarGridSpec(
            num_scalar_prefetch=0,
            grid=(n_split, steps),
            in_specs=in_specs,
            out_specs=out_spec,
            scratch_shapes=[pltpu.VMEM((1, 1), jnp.float32)   # inter, psum,
                            for _ in range(5)]),              # tsum, l1, lol
        compiler_params=pltpu.CompilerParams(
            dimension_semantics=("parallel", "arbitrary"),
            vmem_limit_bytes=32 * 1024 * 1024),   # safe on 64 MiB-VMEM v7x
        cost_estimate=cost,
    )(seg_in, tgt2, x2, img2, za2, zp2)

    # Tiny plain-JAX epilogue: combine the per-core partial sums.
    sums = jnp.sum(out[:, 0, :], axis=0)
    inter, psum, tsum, l1, lol = sums[0], sums[1], sums[2], sums[3], sums[4]
    smooth = 0.1
    d_loss = 1.0 - (2.0 * inter + smooth) / (psum + tsum + smooth)
    if not train:
        return {'dice_loss': d_loss}
    r_loss = l1 / float(n_reco)
    l_loss = lol
    total = r_loss * alpha + l_loss * (1.0 - alpha) + d_loss * dice_w
    return {'train_loss': total, 'dice_loss': d_loss,
            'reco_loss': r_loss, 'lol_loss': l_loss}


def _reference(y_true, seg, x_, z_a, z_s_proj, images, alpha=0.2, dice_w=5.0):
    """Plain-JAX reference of the PyTorch forward (for the sanity check)."""
    f32 = jnp.float32
    smooth = 0.1
    pred = seg.astype(f32)[:, 1].reshape(-1)
    tgt = y_true.astype(f32).reshape(-1)
    inter = jnp.sum(pred * tgt)
    d = 1.0 - (2.0 * inter + smooth) / (jnp.sum(pred) + jnp.sum(tgt) + smooth)
    r = jnp.mean(jnp.abs(x_.astype(f32) - images.astype(f32)))
    a = z_a.astype(f32).reshape(z_a.shape[0], -1)
    b = z_s_proj.astype(f32).reshape(z_s_proj.shape[0], -1)
    na = jnp.maximum(jnp.linalg.norm(a, axis=1), 1e-8)
    nb = jnp.maximum(jnp.linalg.norm(b, axis=1), 1e-8)
    l = jnp.mean(jnp.sum(a * b, axis=1) / (na * nb))
    return r * alpha + l * (1 - alpha) + d * dice_w, d, r, l


if __name__ == "__main__":
    key = jax.random.PRNGKey(0)
    ks = jax.random.split(key, 8)

    # Shapes consistent with the module: B=2, C=4 image channels, 16x16
    # spatial, latent (4, 8, 8).  Large streams are fed in bf16 (memory-bound
    # kernel -> half the HBM bytes); the kernel accumulates in f32.
    B, C, H, W = 2, 4, 16, 16
    Cz, Hz, Wz = 4, 8, 8

    y_true = (jax.random.uniform(ks[0], (B, H, W)) > 0.5).astype(jnp.bfloat16)
    seg = jax.nn.softmax(jax.random.normal(ks[1], (B, 2, H, W)),
                         axis=1).astype(jnp.bfloat16)
    x_ = jax.random.normal(ks[2], (B, C, H, W)).astype(jnp.bfloat16)
    images = jax.random.normal(ks[3], (B, C, H, W)).astype(jnp.bfloat16)
    z_s = jax.random.normal(ks[4], (B, Cz, Hz, Wz))
    z_a = jax.random.normal(ks[5], (B, Cz, Hz, Wz))
    z_s_shift = jax.random.normal(ks[6], (B, Cz, Hz, Wz))
    z_s_proj = jax.random.normal(ks[7], (B, Cz, Hz, Wz))

    ref_total, ref_d, ref_r, ref_l = _reference(y_true, seg, x_, z_a, z_s_proj,
                                                images)

    # (num_core_splits, grid_steps): auto tiling, explicit multi-step grid
    # (exercises init/accumulate/finalize), and the 2-TensorCore v7x split
    # (runs correctly, just sequentially, on single-core v5e/v6e).
    # TODO(synk): auto-pick num_core_splits=2 when running on a 2-TC chip.
    for n_split, steps in ((1, None), (1, 2), (2, None)):
        out = fed_dis_loss(y_true, seg, x_, z_s, z_a, z_s_shift, z_s_proj,
                           images, train=True, num_core_splits=n_split,
                           grid_steps=steps)
        out = jax.tree_util.tree_map(jax.block_until_ready, out)
        assert jnp.allclose(out['train_loss'], ref_total, atol=1e-4), \
            (n_split, steps, out, ref_total)
        assert jnp.allclose(out['dice_loss'], ref_d, atol=1e-4)
        assert jnp.allclose(out['reco_loss'], ref_r, atol=1e-4)
        assert jnp.allclose(out['lol_loss'], ref_l, atol=1e-4)

    # Eval mode returns only the dice loss (matches the torch module).
    out_eval = fed_dis_loss(y_true, seg, x_, z_s, z_a, z_s_shift, z_s_proj,
                            images, train=False)
    assert set(out_eval) == {'dice_loss'}
    assert jnp.allclose(jax.block_until_ready(out_eval['dice_loss']), ref_d,
                        atol=1e-4)

    # Non-128-aligned spatial size exercises the full-extent fallback path.
    Hs, Ws = 12, 12
    y2 = (jax.random.uniform(ks[0], (B, Hs, Ws)) > 0.5).astype(jnp.float32)
    s2 = jax.nn.softmax(jax.random.normal(ks[1], (B, 2, Hs, Ws)), axis=1)
    x2_ = jax.random.normal(ks[2], (B, 1, Hs, Ws))
    im2 = jax.random.normal(ks[3], (B, 1, Hs, Ws))
    zl = jax.random.normal(ks[5], (B, 2, 4, 4))
    zp = jax.random.normal(ks[7], (B, 2, 4, 4))
    ref2 = _reference(y2, s2, x2_, zl, zp, im2)
    out2 = fed_dis_loss(y2, s2, x2_, zl, zl, zl, zp, im2, train=True)
    out2 = jax.tree_util.tree_map(jax.block_until_ready, out2)
    assert jnp.allclose(out2['train_loss'], ref2[0], atol=1e-4)
    assert jnp.allclose(out2['dice_loss'], ref2[1], atol=1e-4)

    print("KERNEL_OK")
</pallas_src>

<mosaic_0001>
module attributes {stable_mosaic.version = 11 : i64} {
  func.func @_fed_dis_partials_kernel(%arg0: i32, %arg1: i32, %arg2: memref<2x256xbf16, #tpu.memory_space<vmem>>, %arg3: memref<2x256xbf16, #tpu.memory_space<vmem>>, %arg4: memref<8x256xbf16, #tpu.memory_space<vmem>>, %arg5: memref<8x256xbf16, #tpu.memory_space<vmem>>, %arg6: memref<2x256xf32, #tpu.memory_space<vmem>>, %arg7: memref<2x256xf32, #tpu.memory_space<vmem>>, %arg8: memref<1x8x128xf32, #tpu.memory_space<vmem>>, %arg9: memref<1x1xf32, #tpu.memory_space<vmem>>, %arg10: memref<1x1xf32, #tpu.memory_space<vmem>>, %arg11: memref<1x1xf32, #tpu.memory_space<vmem>>, %arg12: memref<1x1xf32, #tpu.memory_space<vmem>>, %arg13: memref<1x1xf32, #tpu.memory_space<vmem>>) attributes {dimension_semantics = [#tpu.dimension_semantics<parallel>, #tpu.dimension_semantics<arbitrary>], iteration_bounds = array<i64: 1, 1>, scalar_prefetch = 0 : i64, scratch_operands = 5 : i64, tpu.core_type = #tpu.core_type<tc>, window_params = [{transform_indices = @transform_0, window_bounds = array<i64: 2, 256>}, {transform_indices = @transform_1, window_bounds = array<i64: 2, 256>}, {transform_indices = @transform_2, window_bounds = array<i64: 8, 256>}, {transform_indices = @transform_3, window_bounds = array<i64: 8, 256>}, {pipeline_mode = #tpu.pipeline_mode<synchronous>, transform_indices = @transform_4, window_bounds = array<i64: 2, 256>}, {pipeline_mode = #tpu.pipeline_mode<synchronous>, transform_indices = @transform_5, window_bounds = array<i64: 2, 256>}, {transform_indices = @transform_6, window_bounds = array<i64: 1, 8, 128>}]} {
    %c0_i32 = arith.constant 0 : i32
    %0 = arith.cmpi eq, %arg1, %c0_i32 : i32
    %1 = arith.extui %0 : i1 to i32
    %c0_i32_0 = arith.constant 0 : i32
    %2 = arith.cmpi ne, %1, %c0_i32_0 : i32
    scf.if %2 {
      %cst_32 = arith.constant 0.000000e+00 : f32
      %54 = vector.broadcast %cst_32 : f32 to vector<1x1xf32>
      %c0_33 = arith.constant 0 : index
      %c0_34 = arith.constant 0 : index
      %55 = vector.load %arg9[%c0_33, %c0_34] : memref<1x1xf32, #tpu.memory_space<vmem>>, vector<1x1xf32>
      tpu.vector_store %arg9[%c0_33, %c0_34], %54 {strides = array<i32>} : memref<1x1xf32, #tpu.memory_space<vmem>>, vector<1x1xf32>,
      %cst_35 = arith.constant 0.000000e+00 : f32
      %56 = vector.broadcast %cst_35 : f32 to vector<1x1xf32>
      %c0_36 = arith.constant 0 : index
      %c0_37 = arith.constant 0 : index
      %57 = vector.load %arg10[%c0_36, %c0_37] : memref<1x1xf32, #tpu.memory_space<vmem>>, vector<1x1xf32>
      tpu.vector_store %arg10[%c0_36, %c0_37], %56 {strides = array<i32>} : memref<1x1xf32, #tpu.memory_space<vmem>>, vector<1x1xf32>,
      %cst_38 = arith.constant 0.000000e+00 : f32
      %58 = vector.broadcast %cst_38 : f32 to vector<1x1xf32>
      %c0_39 = arith.constant 0 : index
      %c0_40 = arith.constant 0 : index
      %59 = vector.load %arg11[%c0_39, %c0_40] : memref<1x1xf32, #tpu.memory_space<vmem>>, vector<1x1xf32>
      tpu.vector_store %arg11[%c0_39, %c0_40], %58 {strides = array<i32>} : memref<1x1xf32, #tpu.memory_space<vmem>>, vector<1x1xf32>,
      %cst_41 = arith.constant 0.000000e+00 : f32
      %60 = vector.broadcast %cst_41 : f32 to vector<1x1xf32>
      %c0_42 = arith.constant 0 : index
      %c0_43 = arith.constant 0 : index
      %61 = vector.load %arg12[%c0_42, %c0_43] : memref<1x1xf32, #tpu.memory_space<vmem>>, vector<1x1xf32>
      tpu.vector_store %arg12[%c0_42, %c0_43], %60 {strides = array<i32>} : memref<1x1xf32, #tpu.memory_space<vmem>>, vector<1x1xf32>,
      %cst_44 = arith.constant 0.000000e+00 : f32
      %62 = vector.broadcast %cst_44 : f32 to vector<1x1xf32>
      %c0_45 = arith.constant 0 : index
      %c0_46 = arith.constant 0 : index
      %63 = vector.load %arg13[%c0_45, %c0_46] : memref<1x1xf32, #tpu.memory_space<vmem>>, vector<1x1xf32>
      tpu.vector_store %arg13[%c0_45, %c0_46], %62 {strides = array<i32>} : memref<1x1xf32, #tpu.memory_space<vmem>>, vector<1x1xf32>,
    } else {
    }
    %c0_i32_1 = arith.constant 0 : i32
    %3 = arith.cmpi eq, %arg1, %c0_i32_1 : i32
    %c0_i32_2 = arith.constant 0 : i32
    %4 = arith.cmpi eq, %arg0, %c0_i32_2 : i32
    %5 = arith.andi %3, %4 : i1
    %6 = arith.extui %5 : i1 to i32
    %c0_i32_3 = arith.constant 0 : i32
    %7 = arith.cmpi ne, %6, %c0_i32_3 : i32
    scf.if %7 {
      %c0_32 = arith.constant 0 : index
      %c0_33 = arith.constant 0 : index
      %54 = vector.load %arg6[%c0_32, %c0_33] : memref<2x256xf32, #tpu.memory_space<vmem>>, vector<2x256xf32>
      %c0_34 = arith.constant 0 : index
      %c0_35 = arith.constant 0 : index
      %55 = vector.load %arg7[%c0_34, %c0_35] : memref<2x256xf32, #tpu.memory_space<vmem>>, vector<2x256xf32>
      %56 = arith.mulf %54, %55 : vector<2x256xf32>
      %cst_36 = arith.constant dense<0.000000e+00> : vector<2xf32>
      %57 = vector.multi_reduction <add>, %56, %cst_36 [1] : vector<2x256xf32> to vector<2xf32>
      %58 = vector.shape_cast %57 : vector<2xf32> to vector<2x1xf32>
      %59 = arith.mulf %54, %54 : vector<2x256xf32>
      %cst_37 = arith.constant dense<0.000000e+00> : vector<2xf32>
      %60 = vector.multi_reduction <add>, %59, %cst_37 [1] : vector<2x256xf32> to vector<2xf32>
      %61 = vector.shape_cast %60 : vector<2xf32> to vector<2x1xf32>
      %62 = math.sqrt %61 : vector<2x1xf32>
      %cst_38 = arith.constant 9.99999993E-9 : f32
      %63 = vector.broadcast %cst_38 : f32 to vector<2x1xf32>
      %64 = arith.maximumf %62, %63 : vector<2x1xf32>
      %65 = arith.mulf %55, %55 : vector<2x256xf32>
      %cst_39 = arith.constant dense<0.000000e+00> : vector<2xf32>
      %66 = vector.multi_reduction <add>, %65, %cst_39 [1] : vector<2x256xf32> to vector<2xf32>
      %67 = vector.shape_cast %66 : vector<2xf32> to vector<2x1xf32>
      %68 = math.sqrt %67 : vector<2x1xf32>
      %cst_40 = arith.constant 9.99999993E-9 : f32
      %69 = vector.broadcast %cst_40 : f32 to vector<2x1xf32>
      %70 = arith.maximumf %68, %69 : vector<2x1xf32>
      %71 = arith.mulf %64, %70 : vector<2x1xf32>
      %72 = arith.divf %58, %71 : vector<2x1xf32>
      %cst_41 = arith.constant dense<0.000000e+00> : vector<1xf32>
      %73 = vector.multi_reduction <add>, %72, %cst_41 [0] : vector<2x1xf32> to vector<1xf32>
      %74 = vector.shape_cast %73 : vector<1xf32> to vector<1x1xf32>
      %cst_42 = arith.constant 5.000000e-01 : f32
      %75 = vector.broadcast %cst_42 : f32 to vector<1x1xf32>
      %76 = arith.mulf %74, %75 : vector<1x1xf32>
      %c0_43 = arith.constant 0 : index
      %c0_44 = arith.constant 0 : index
      %77 = vector.load %arg13[%c0_43, %c0_44] : memref<1x1xf32, #tpu.memory_space<vmem>>, vector<1x1xf32>
      tpu.vector_store %arg13[%c0_43, %c0_44], %76 {strides = array<i32>} : memref<1x1xf32, #tpu.memory_space<vmem>>, vector<1x1xf32>,
    } else {
    }
    %c0 = arith.constant 0 : index
    %c0_4 = arith.constant 0 : index
    %8 = vector.load %arg2[%c0, %c0_4] : memref<2x256xbf16, #tpu.memory_space<vmem>>, vector<2x256xbf16>
    %9 = arith.extf %8 : vector<2x256xbf16> to vector<2x256xf32>
    %c0_5 = arith.constant 0 : index
    %c0_6 = arith.constant 0 : index
    %10 = vector.load %arg3[%c0_5, %c0_6] : memref<2x256xbf16, #tpu.memory_space<vmem>>, vector<2x256xbf16>
    %11 = arith.extf %10 : vector<2x256xbf16> to vector<2x256xf32>
    %c0_7 = arith.constant 0 : index
    %c0_8 = arith.constant 0 : index
    %12 = vector.load %arg9[%c0_7, %c0_8] : memref<1x1xf32, #tpu.memory_space<vmem>>, vector<1x1xf32>
    %13 = arith.mulf %9, %11 : vector<2x256xf32>
    %14 = vector.shape_cast %13 : vector<2x256xf32> to vector<1x2x256xf32>
    %cst = arith.constant dense<0.000000e+00> : vector<1xf32>
    %15 = vector.multi_reduction <add>, %14, %cst [1, 2] : vector<1x2x256xf32> to vector<1xf32>
    %16 = vector.shape_cast %15 : vector<1xf32> to vector<1x1x1xf32>
    %17 = vector.extract %16[0, 0, 0] : f32 from vector<1x1x1xf32>
    %18 = vector.broadcast %17 : f32 to vector<1x1xf32>
    %19 = arith.addf %12, %18 : vector<1x1xf32>
    %c0_9 = arith.constant 0 : index
    %c0_10 = arith.constant 0 : index
    %20 = vector.load %arg9[%c0_9, %c0_10] : memref<1x1xf32, #tpu.memory_space<vmem>>, vector<1x1xf32>
    tpu.vector_store %arg9[%c0_9, %c0_10], %19 {strides = array<i32>} : memref<1x1xf32, #tpu.memory_space<vmem>>, vector<1x1xf32>,
    %c0_11 = arith.constant 0 : index
    %c0_12 = arith.constant 0 : index
    %21 = vector.load %arg10[%c0_11, %c0_12] : memref<1x1xf32, #tpu.memory_space<vmem>>, vector<1x1xf32>
    %22 = vector.shape_cast %9 : vector<2x256xf32> to vector<1x2x256xf32>
    %cst_13 = arith.constant dense<0.000000e+00> : vector<1xf32>
    %23 = vector.multi_reduction <add>, %22, %cst_13 [1, 2] : vector<1x2x256xf32> to vector<1xf32>
    %24 = vector.shape_cast %23 : vector<1xf32> to vector<1x1x1xf32>
    %25 = vector.extract %24[0, 0, 0] : f32 from vector<1x1x1xf32>
    %26 = vector.broadcast %25 : f32 to vector<1x1xf32>
    %27 = arith.addf %21, %26 : vector<1x1xf32>
    %c0_14 = arith.constant 0 : index
    %c0_15 = arith.constant 0 : index
    %28 = vector.load %arg10[%c0_14, %c0_15] : memref<1x1xf32, #tpu.memory_space<vmem>>, vector<1x1xf32>
    tpu.vector_store %arg10[%c0_14, %c0_15], %27 {strides = array<i32>} : memref<1x1xf32, #tpu.memory_space<vmem>>, vector<1x1xf32>,
    %c0_16 = arith.constant 0 : index
    %c0_17 = arith.constant 0 : index
    %29 = vector.load %arg11[%c0_16, %c0_17] : memref<1x1xf32, #tpu.memory_space<vmem>>, vector<1x1xf32>
    %30 = vector.shape_cast %11 : vector<2x256xf32> to vector<1x2x256xf32>
    %cst_18 = arith.constant dense<0.000000e+00> : vector<1xf32>
    %31 = vector.multi_reduction <add>, %30, %cst_18 [1, 2] : vector<1x2x256xf32> to vector<1xf32>
    %32 = vector.shape_cast %31 : vector<1xf32> to vector<1x1x1xf32>
    %33 = vector.extract %32[0, 0, 0] : f32 from vector<1x1x1xf32>
    %34 = vector.broadcast %33 : f32 to vector<1x1xf32>
    %35 = arith.addf %29, %34 : vector<1x1xf32>
    %c0_19 = arith.constant 0 : index
    %c0_20 = arith.constant 0 : index
    %36 = vector.load %arg11[%c0_19, %c0_20] : memref<1x1xf32, #tpu.memory_space<vmem>>, vector<1x1xf32>
    tpu.vector_store %arg11[%c0_19, %c0_20], %35 {strides = array<i32>} : memref<1x1xf32, #tpu.memory_space<vmem>>, vector<1x1xf32>,
    %c0_21 = arith.constant 0 : index
    %c0_22 = arith.constant 0 : index
    %37 = vector.load %arg4[%c0_21, %c0_22] : memref<8x256xbf16, #tpu.memory_space<vmem>>, vector<8x256xbf16>
    %38 = arith.extf %37 : vector<8x256xbf16> to vector<8x256xf32>
    %c0_23 = arith.constant 0 : index
    %c0_24 = arith.constant 0 : index
    %39 = vector.load %arg5[%c0_23, %c0_24] : memref<8x256xbf16, #tpu.memory_space<vmem>>, vector<8x256xbf16>
    %40 = arith.extf %39 : vector<8x256xbf16> to vector<8x256xf32>
    %41 = arith.subf %38, %40 : vector<8x256xf32>
    %c0_25 = arith.constant 0 : index
    %c0_26 = arith.constant 0 : index
    %42 = vector.load %arg12[%c0_25, %c0_26] : memref<1x1xf32, #tpu.memory_space<vmem>>, vector<1x1xf32>
    %43 = math.absf %41 : vector<8x256xf32>
    %44 = vector.shape_cast %43 : vector<8x256xf32> to vector<1x8x256xf32>
    %cst_27 = arith.constant dense<0.000000e+00> : vector<1xf32>
    %45 = vector.multi_reduction <add>, %44, %cst_27 [1, 2] : vector<1x8x256xf32> to vector<1xf32>
    %46 = vector.shape_cast %45 : vector<1xf32> to vector<1x1x1xf32>
    %47 = vector.extract %46[0, 0, 0] : f32 from vector<1x1x1xf32>
    %48 = vector.broadcast %47 : f32 to vector<1x1xf32>
    %49 = arith.addf %42, %48 : vector<1x1xf32>
    %c0_28 = arith.constant 0 : index
    %c0_29 = arith.constant 0 : index
    %50 = vector.load %arg12[%c0_28, %c0_29] : memref<1x1xf32, #tpu.memory_space<vmem>>, vector<1x1xf32>
    tpu.vector_store %arg12[%c0_28, %c0_29], %49 {strides = array<i32>} : memref<1x1xf32, #tpu.memory_space<vmem>>, vector<1x1xf32>,
    %c0_i32_30 = arith.constant 0 : i32
    %51 = arith.cmpi eq, %arg1, %c0_i32_30 : i32
    %52 = arith.extui %51 : i1 to i32
    %c0_i32_31 = arith.constant 0 : i32
    %53 = arith.cmpi ne, %52, %c0_i32_31 : i32
    scf.if %53 {
      %54 = tpu.iota {dimensions = array<i32: 2>} : vector<1x8x128xi32>
      %cst_32 = arith.constant 0.000000e+00 : f32
      %55 = vector.broadcast %cst_32 : f32 to vector<1x8x128xf32>
      %c0_i32_33 = arith.constant 0 : i32
      %56 = vector.broadcast %c0_i32_33 : i32 to vector<1x8x128xi32>
      %57 = arith.cmpi eq, %54, %56 : vector<1x8x128xi32>
      %c0_34 = arith.constant 0 : index
      %c0_35 = arith.constant 0 : index
      %58 = vector.load %arg9[%c0_34, %c0_35] : memref<1x1xf32, #tpu.memory_space<vmem>>, vector<1x1xf32>
      %59 = vector.shape_cast %58 : vector<1x1xf32> to vector<1x1x1xf32>
      %60 = vector.broadcast %59 : vector<1x1x1xf32> to vector<1x8x128xf32>
      %61 = arith.select %57, %60, %55 : vector<1x8x128xi1>, vector<1x8x128xf32>
      %c1_i32 = arith.constant 1 : i32
      %62 = vector.broadcast %c1_i32 : i32 to vector<1x8x128xi32>
      %63 = arith.cmpi eq, %54, %62 : vector<1x8x128xi32>
      %c0_36 = arith.constant 0 : index
      %c0_37 = arith.constant 0 : index
      %64 = vector.load %arg10[%c0_36, %c0_37] : memref<1x1xf32, #tpu.memory_space<vmem>>, vector<1x1xf32>
      %65 = vector.shape_cast %64 : vector<1x1xf32> to vector<1x1x1xf32>
      %66 = vector.broadcast %65 : vector<1x1x1xf32> to vector<1x8x128xf32>
      %67 = arith.select %63, %66, %61 : vector<1x8x128xi1>, vector<1x8x128xf32>
      %c2_i32 = arith.constant 2 : i32
      %68 = vector.broadcast %c2_i32 : i32 to vector<1x8x128xi32>
      %69 = arith.cmpi eq, %54, %68 : vector<1x8x128xi32>
      %c0_38 = arith.constant 0 : index
      %c0_39 = arith.constant 0 : index
      %70 = vector.load %arg11[%c0_38, %c0_39] : memref<1x1xf32, #tpu.memory_space<vmem>>, vector<1x1xf32>
      %71 = vector.shape_cast %70 : vector<1x1xf32> to vector<1x1x1xf32>
      %72 = vector.broadcast %71 : vector<1x1x1xf32> to vector<1x8x128xf32>
      %73 = arith.select %69, %72, %67 : vector<1x8x128xi1>, vector<1x8x128xf32>
      %c3_i32 = arith.constant 3 : i32
      %74 = vector.broadcast %c3_i32 : i32 to vector<1x8x128xi32>
      %75 = arith.cmpi eq, %54, %74 : vector<1x8x128xi32>
      %c0_40 = arith.constant 0 : index
      %c0_41 = arith.constant 0 : index
      %76 = vector.load %arg12[%c0_40, %c0_41] : memref<1x1xf32, #tpu.memory_space<vmem>>, vector<1x1xf32>
      %77 = vector.shape_cast %76 : vector<1x1xf32> to vector<1x1x1xf32>
      %78 = vector.broadcast %77 : vector<1x1x1xf32> to vector<1x8x128xf32>
      %79 = arith.select %75, %78, %73 : vector<1x8x128xi1>, vector<1x8x128xf32>
      %c4_i32 = arith.constant 4 : i32
      %80 = vector.broadcast %c4_i32 : i32 to vector<1x8x128xi32>
      %81 = arith.cmpi eq, %54, %80 : vector<1x8x128xi32>
      %c0_42 = arith.constant 0 : index
      %c0_43 = arith.constant 0 : index
      %82 = vector.load %arg13[%c0_42, %c0_43] : memref<1x1xf32, #tpu.memory_space<vmem>>, vector<1x1xf32>
      %83 = vector.shape_cast %82 : vector<1x1xf32> to vector<1x1x1xf32>
      %84 = vector.broadcast %83 : vector<1x1x1xf32> to vector<1x8x128xf32>
      %85 = arith.select %81, %84, %79 : vector<1x8x128xi1>, vector<1x8x128xf32>
      %c0_44 = arith.constant 0 : index
      %c0_45 = arith.constant 0 : index
      %c0_46 = arith.constant 0 : index
      %86 = vector.load %arg8[%c0_44, %c0_45, %c0_46] : memref<1x8x128xf32, #tpu.memory_space<vmem>>, vector<1x8x128xf32>
      tpu.vector_store %arg8[%c0_44, %c0_45, %c0_46], %85 {strides = array<i32>} : memref<1x8x128xf32, #tpu.memory_space<vmem>>, vector<1x8x128xf32>,
    } else {
    }
    return
  }
  func.func @transform_0(%arg0: i32, %arg1: i32) -> (i32, i32) {
    %c1_i32 = arith.constant 1 : i32
    %0 = arith.muli %arg0, %c1_i32 : i32
    %c1_i32_0 = arith.constant 1 : i32
    %1 = arith.addi %c1_i32_0, %0 : i32
    %2 = arith.addi %1, %arg1 : i32
    %c0_i32 = arith.constant 0 : i32
    %c0_i32_1 = arith.constant 0 : i32
    return %c0_i32, %2 : i32, i32
  }
  func.func @transform_1(%arg0: i32, %arg1: i32) -> (i32, i32) {
    %c1_i32 = arith.constant 1 : i32
    %0 = arith.muli %arg0, %c1_i32 : i32
    %1 = arith.addi %0, %arg1 : i32
    %c0_i32 = arith.constant 0 : i32
    %c0_i32_0 = arith.constant 0 : i32
    return %c0_i32, %1 : i32, i32
  }
  func.func @transform_2(%arg0: i32, %arg1: i32) -> (i32, i32) {
    %c1_i32 = arith.constant 1 : i32
    %0 = arith.muli %arg0, %c1_i32 : i32
    %1 = arith.addi %0, %arg1 : i32
    %c0_i32 = arith.constant 0 : i32
    %c0_i32_0 = arith.constant 0 : i32
    return %c0_i32, %1 : i32, i32
  }
  func.func @transform_3(%arg0: i32, %arg1: i32) -> (i32, i32) {
    %c1_i32 = arith.constant 1 : i32
    %0 = arith.muli %arg0, %c1_i32 : i32
    %1 = arith.addi %0, %arg1 : i32
    %c0_i32 = arith.constant 0 : i32
    %c0_i32_0 = arith.constant 0 : i32
    return %c0_i32, %1 : i32, i32
  }
  func.func @transform_4(%arg0: i32, %arg1: i32) -> (i32, i32) {
    %c0_i32 = arith.constant 0 : i32
    %c0_i32_0 = arith.constant 0 : i32
    %c0_i32_1 = arith.constant 0 : i32
    return %c0_i32, %c0_i32_0 : i32, i32
  }
  func.func @transform_5(%arg0: i32, %arg1: i32) -> (i32, i32) {
    %c0_i32 = arith.constant 0 : i32
    %c0_i32_0 = arith.constant 0 : i32
    %c0_i32_1 = arith.constant 0 : i32
    return %c0_i32, %c0_i32_0 : i32, i32
  }
  func.func @transform_6(%arg0: i32, %arg1: i32) -> (i32, i32, i32) {
    %c0_i32 = arith.constant 0 : i32
    %c0_i32_0 = arith.constant 0 : i32
    %c0_i32_1 = arith.constant 0 : i32
    return %arg0, %c0_i32, %c0_i32_0 : i32, i32, i32
  }
}

</mosaic_0001>

<bundles_post_ra>
// kernel: tpu_custom_call.1
= control target key start
LH: loop header
LB: loop body
LE: loop exit
PB: predicated region body
PF: predicated region fallthrough
CT: control target
= control target key end

     0   :  { %11 = vsyncpa [#allocation8], 0  ;;  %s618_s0 = inlined_call_operand.hbm [shape: bf16[2,512], index: 0, kind: input, shape index: {}]   ;;  %s619_s1 = inlined_call_operand.vmem [shape: bf16[2,256], index: 1, kind: input, shape index: {}]   ;;  %s620_s2 = inlined_call_operand.hbm [shape: bf16[8,256], index: 2, kind: input, shape index: {}]   ;;  %s621_s3 = inlined_call_operand.vmem [shape: bf16[8,256], index: 3, kind: input, shape index: {}]   ;;  %s622_s4 = inlined_call_operand.vmem [shape: f32[2,256], index: 4, kind: input, shape index: {}]   ;;  %s623_s5 = inlined_call_operand.vmem [shape: f32[2,256], index: 5, kind: input, shape index: {}]   ;;  %s624_s6 = inlined_call_operand.hbm [shape: f32[1,8,128], index: 6, kind: output, shape index: {}]  }
   0x1   :  { %12 = vsyncpa [#allocation11], 0 }
   0x2   :  { %13 = vsyncpa [#allocation9], 0  ;;  %s395_s23 = scalar_lea.hbm %s618_s0, 32  ;;  %s507_s24 = smov [#allocation7]  }
   0x3   :  { %s25_s25 = sshll.u32 %s507_s24, 4  ;;  %s508_s26 = smov [#allocation10]   ;;  %s26_s25 = int_to_ptr.vmem [resolvable:$true] %s25_s25 }
   0x4   :  { %s48_s27 = sshll.u32 %s508_s26, 4  ;;  %s456_s30 = scalar_lea.hbm %s618_s0, 64  ;;  %s49_s27 = int_to_ptr.vmem [resolvable:$true] %s48_s27 }
   0x5   :  { %p433_p0 = scmp.ne.s32.totalorder %s395_s23, %s456_s30  ;;  %p435_p1 = scmp.lt.u32.totalorder %s395_s23, %s618_s0 }
   0x6   :  { %p436_p2 = scmp.lt.u32.totalorder %s456_s30, %s456_s30  ;;  %p438_p4 = scmp.lt.u32.totalorder %s456_s30, %s395_s23 }
   0x8   :  { %p437_p3 = por %p436_p2, %p435_p1 }
   0xa   :  { %p439_p5 = por %p438_p4, %p437_p3 }
   0xc   :  { %p440_p6 = pnand %p439_p5, %p433_p0 }
   0xe   :  { %443 = shalt.err (!%p440_p6)
}
   0xf   :  { %s444_s9 = scalar_lea.vmem %s26_s25, 32  ;;  %p449_p8 = scmp.lt.s32.totalorder %s26_s25, %s26_s25 }
  0x10   :  { %p445_p7 = scmp.ne.s32.totalorder %s26_s25, %s444_s9  ;;  %p450_p9 = scmp.lt.s32.totalorder %s444_s9, %s444_s9 }
  0x12   :  { %p451_p10 = por %p450_p9, %p449_p8 }
  0x14   :  { %p452_p11 = pnand %p451_p10, %p445_p7 }
  0x16   :  { %455 = shalt.err (!%p452_p11)
}
  0x17   :  { %28 = dma.hbm_to_vmem [thread:$0]  %s395_s23, 32, %s26_s25, [#allocation8]  }
  0x18   :  { %s457_s12 = scalar_lea.hbm %s620_s2, 128 }
  0x19   :  { %p458_p12 = scmp.ne.s32.totalorder %s620_s2, %s457_s12  ;;  %p461_p13 = scmp.lt.u32.totalorder %s457_s12, %s620_s2 }
  0x1b   :  { %p463_p0 = pnand %p461_p13, %p458_p12 }
  0x1d   :  { %466 = shalt.err (!%p463_p0)
}
  0x1e   :  { %s467_s16 = scalar_lea.vmem %s49_s27, 128  ;;  %p472_p2 = scmp.lt.s32.totalorder %s49_s27, %s49_s27 }
  0x1f   :  { %p468_p1 = scmp.ne.s32.totalorder %s49_s27, %s467_s16  ;;  %p473_p3 = scmp.lt.s32.totalorder %s467_s16, %s467_s16 }
  0x21   :  { %p474_p4 = por %p473_p3, %p472_p2 }
  0x23   :  { %p475_p5 = pnand %p474_p4, %p468_p1 }
  0x25   :  { %478 = shalt.err (!%p475_p5)
}
  0x26   :  { %51 = dma.hbm_to_vmem [thread:$0]  %s620_s2, 128, %s49_s27, [#allocation11]  }
  0x27   :  { %501 = dma.done.wait [#allocation8], 32  }
  0x28   :  { %502 = vsyncadd [#allocation8], 4294967264 }
  0x29   :  { %503 = dma.done.wait [#allocation11], 128  }
  0x2a   :  { %504 = vsyncadd [#allocation11], 4294967168  ;;  %v125_v0 = vlaneseq  ;;  %v509_v1 = vmov 1983009808   ;;  %vm132_vm0 = vcmask 1041408   ;;  %v289_v8 = vld [vmem:[#allocation10] sm:$0xff] }
  0x2b   :  { %v123_v2 = vunpack.c.l.s4 %v509_v1  ;;  %v203_v6 = vld [vmem:[%s619_s1] sm:$0x3]  ;;  %v201_v7 = vld [vmem:[#allocation7] sm:$0x3]  ;;  %v290_v11 = vunpack.c.l.bf16 %v289_v8  ;;  %v291_v12 = vunpack.c.h.bf16 %v289_v8  ;;  %vm107_vm1 = vcmask 0   ;;  %s512_s26 = smov [#allocation12]  }
  0x2c   :  { %v126_v3 = vshrl.u32 %v125_v0, 7  ;;  %v204_v9 = vunpack.c.l.bf16 %v203_v6  ;;  %v202_v10 = vunpack.c.l.bf16 %v201_v7  ;;  %v292_v13 = vld [vmem:[%s621_s3] sm:$0xff]  ;;  %v510_v57 = vmov 0.0   ;;  %s385_s27 = sshll.u32 %s512_s26, 4  ;;  %s386_s27 = int_to_ptr.vmem [resolvable:$true] %s385_s27 }
  0x2d   :  { %v124_v4 = vunpack.c.0.s8 %v123_v2  ;;  %v119_v14 = vld [vmem:[%s623_s5] sm:$0xf]  ;;  %v293_v16 = vunpack.c.l.bf16 %v292_v13  ;;  %v294_v17 = vunpack.c.h.bf16 %v292_v13  ;;  %112 = vst.msk [vmem:[#allocation6] sm:$0x1] %vm107_vm1, %v510_v57  ;;  %108 = vst.msk [vmem:[#allocation2] sm:$0x1] %vm107_vm1, %v510_v57  ;;  %p484_p7 = scmp.lt.s32.totalorder %s386_s27, %s386_s27 }
  0x2e   :  { %v118_v15 = vld [vmem:[%s622_s4] sm:$0xf]  ;;  %v163_v18 = vmul.f32 %v119_v14, %v119_v14  ;;  %v206_v21 = vmul.f32 %v204_v9, %v202_v10  ;;  %109 = vst.msk [vmem:[#allocation3] sm:$0x1] %vm107_vm1, %v510_v57  ;;  %110 = vst.msk [vmem:[#allocation4] sm:$0x1] %vm107_vm1, %v510_v57 }
  0x2f   :  { %v127_v5 = vsub.s32 %v124_v4, %v126_v3  ;;  %v138_v19 = vmul.f32 %v118_v15, %v118_v15  ;;  %v295_v23 = vsub.f32 %v290_v11, %v293_v16  ;;  %v296_v24 = vsub.f32 %v291_v12, %v294_v17  ;;  %111 = vst.msk [vmem:[#allocation5] sm:$0x1] %vm107_vm1, %v510_v57  ;;  %s479_s28 = scalar_lea.vmem %s386_s27, 128 }
  0x30   :  { %v120_v33 = vmul.f32 %v119_v14, %v118_v15  ;;  %v511_v58 = vmov 0   ;;  %p480_p6 = scmp.ne.s32.totalorder %s386_s27, %s479_s28  ;;  %p485_p8 = scmp.lt.s32.totalorder %s479_s28, %s479_s28 }
  0x31   :  { %v270_v20 = vrot.slane %v204_v9, %v127_v5  ;;  %v243_v22 = vrot.slane %v202_v10, %v127_v5  ;;  %v171_v25 = vrot.slane %v163_v18, %v127_v5  ;;  %v146_v26 = vrot.slane %v138_v19, %v127_v5  ;;  %424 = vset.pattern.permute.xlu1 %v511_v58 }
  0x32   :  { %v214_v29 = vrot.slane %v206_v21, %v127_v5  ;;  %v298_v31 = vand.u32 2147483647, %v295_v23  ;;  %v299_v32 = vand.u32 2147483647, %v296_v24  ;;  %v128_v45 = vrot.slane %v120_v33, %v127_v5  ;;  %425 = vset.pattern.permute.xlu0 %v511_v58  ;;  %p486_p9 = por %p485_p8, %p484_p7 }
  0x33   :  { %v271_v27 = vcombine.high %v270_v20, %v270_v20  ;;  %v274_v28 = vsel %vm132_vm0, %v270_v20, 0.0  ;;  %v244_v30 = vcombine.high %v243_v22, %v243_v22  ;;  %v172_v37 = vcombine.high %v171_v25, %v171_v25 }
  0x34   :  { %v215_v35 = vcombine.high %v214_v29, %v214_v29  ;;  %v219_v36 = vsel %vm132_vm0, %v214_v29, 0.0  ;;  %v247_v40 = vsel %vm132_vm0, %v243_v22, 0.0  ;;  %v147_v42 = vcombine.high %v146_v26, %v146_v26  ;;  %p487_p10 = pnand %p486_p9, %p480_p6 }
  0x35   :  { %v275_v34 = vsel %vm132_vm0, %v271_v27, 0.0  ;;  %v248_v41 = vsel %vm132_vm0, %v244_v30, 0.0  ;;  %v300_v44 = vadd.f32 %v299_v32, %v298_v31  ;;  %v175_v46 = vsel %vm132_vm0, %v171_v25, 0.0 }
  0x36   :  { %v276_v38 = vadd.f32 %v275_v34, %v274_v28  ;;  %v220_v39 = vsel %vm132_vm0, %v215_v35, 0.0  ;;  %v176_v47 = vsel %vm132_vm0, %v172_v37, 0.0  ;;  %v249_v48 = vadd.f32 %v248_v41, %v247_v40 }
  0x37   :  { %v221_v43 = vadd.f32 %v220_v39, %v219_v36  ;;  %v150_v49 = vsel %vm132_vm0, %v146_v26, 0.0  ;;  %v151_v50 = vsel %vm132_vm0, %v147_v42, 0.0  ;;  %v129_v51 = vcombine.high %v128_v45, %v128_v45 }
  0x38   :  { %277 = vadd.xlane.f32.xlu1 %v276_v38  ;;  %v177_v52 = vadd.f32 %v176_v47, %v175_v46  ;;  %v152_v53 = vadd.f32 %v151_v50, %v150_v49  ;;  %v133_v54 = vsel %vm132_vm0, %v128_v45, 0.0  ;;  %v205_v50 = vld [vmem:[#allocation2] sm:$0x1] }
  0x39   :  { %222 = vadd.xlane.f32.xlu0 %v221_v43  ;;  %v134_v55 = vsel %vm132_vm0, %v129_v51, 0.0 }
  0x3a   :  { %v135_v56 = vadd.f32 %v134_v55, %v133_v54  ;;  %v262_v54 = vld [vmem:[#allocation4] sm:$0x1] }
  0x3c   :  { %301 = vadd.xlane.f32.xlu1 %v300_v44 }
  0x3d   :  { %250 = vadd.xlane.f32.xlu0 %v249_v48 }
  0x40   :  { %178 = vadd.xlane.f32.xlu1 %v177_v52 }
  0x41   :  { %153 = vadd.xlane.f32.xlu0 %v152_v53  ;;  %v235_v53 = vld [vmem:[#allocation3] sm:$0x1] }
  0x45   :  { %136 = vadd.xlane.f32.xlu0 %v135_v56  ;;  %v297_v56 = vld [vmem:[#allocation5] sm:$0x1] }
  0xc5   :  { %v278_v59 = vpop.xlane.xlu1 %277 }
  0xc6   :  { %v279_v60 = vrot.slane %v278_v59, 4  ;;  %v223_v61 = vpop.xlane.xlu0 %222 }
  0xc7   :  { %v224_v63 = vrot.slane %v223_v61, 4 }
  0xc8   :  { %v280_v62 = vadd.f32 %v279_v60, %v278_v59 }
  0xc9   :  { %v302_v1 = vpop.xlane.xlu1 %301  ;;  %v225_v2 = vadd.f32 %v224_v63, %v223_v61 }
  0xca   :  { %v303_v3 = vrot.slane %v302_v1, 4  ;;  %v281_v4 = vrot.slane %v280_v62, 2  ;;  %v251_v5 = vpop.xlane.xlu0 %250 }
  0xcb   :  { %v226_v6 = vrot.slane %v225_v2, 2  ;;  %v252_v8 = vrot.slane %v251_v5, 4 }
  0xcc   :  { %v304_v7 = vadd.f32 %v303_v3, %v302_v1  ;;  %v282_v14 = vadd.f32 %v281_v4, %v280_v62  ;;  %v317_v4 = vand.u32 127, %v125_v0 }
  0xcd   :  { %v179_v9 = vpop.xlane.xlu1 %178  ;;  %v253_v11 = vadd.f32 %v252_v8, %v251_v5  ;;  %v227_v13 = vadd.f32 %v226_v6, %v225_v2 }
  0xce   :  { %v305_v10 = vrot.slane %v304_v7, 2  ;;  %426 = vrsqrt.f32 %v179_v9  ;;  %v154_v12 = vpop.xlane.xlu0 %153  ;;  %v283_v20 = vrot.slane %v282_v14, 1  ;;  %vm182_vm2 = vcmp.eq.f32.partialorder %v179_v9, inf }
  0xcf   :  { %v254_v15 = vrot.slane %v253_v11, 2  ;;  %428 = vrsqrt.f32 %v154_v12  ;;  %v228_v16 = vrot.slane %v227_v13, 1  ;;  %v185_v26 = vand.u32 2147483648, %v179_v9 }
  0xd0   :  { %v306_v17 = vadd.f32 %v305_v10, %v304_v7  ;;  %v284_v24 = vadd.f32 %v283_v20, %v282_v14  ;;  %vm184_vm3 = vcmp.eq.f32.partialorder %v179_v9, 0.0  ;;  %vm157_vm4 = vcmp.eq.f32.partialorder %v154_v12, inf }
  0xd1   :  { %v255_v18 = vadd.f32 %v254_v15, %v253_v11  ;;  %v229_v19 = vadd.f32 %v228_v16, %v227_v13  ;;  %v160_v30 = vand.u32 2147483648, %v154_v12  ;;  %vm159_vm5 = vcmp.eq.f32.partialorder %v154_v12, 0.0 }
  0xd2   :  { %v307_v22 = vrot.slane %v306_v17, 1  ;;  %v137_v39 = vpop.xlane.xlu0 %136  ;;  %vm318_vm6 = vcmp.eq.s32.totalorder %v317_v4, 0  ;;  %vm330_vm7 = vcmp.eq.s32.totalorder %v317_v4, 1  ;;  %vm342_vm8 = vcmp.eq.s32.totalorder %v317_v4, 2 }
  0xd3   :  { %v256_v21 = vrot.slane %v255_v18, 1  ;;  %410 = vpush %v229_v19  ;;  %vm354_vm9 = vcmp.eq.s32.totalorder %v317_v4, 3  ;;  %vm366_vm10 = vcmp.eq.s32.totalorder %v317_v4, 4 }
  0xd4   :  { %v308_v27 = vadd.f32 %v307_v22, %v306_v17 }
  0xd5   :  { %v257_v23 = vadd.f32 %v256_v21, %v255_v18 }
  0xd7   :  { %412 = vpush %v257_v23 }
  0xd8   :  { %v427_v25 = vpop.eup %426  ;;  %414 = vpush %v284_v24 }
  0xd9   :  { %v181_v28 = vmul.f32 %v427_v25, %v179_v9  ;;  %v429_v29 = vpop.eup %428  ;;  %416 = vpush %v308_v27 }
  0xda   :  { %v156_v32 = vmul.f32 %v429_v29, %v154_v12 }
  0xdb   :  { %v183_v31 = vsel %vm182_vm2, %v179_v9, %v181_v28 }
  0xdc   :  { %v186_v33 = vsel %vm184_vm3, %v185_v26, %v183_v31  ;;  %v158_v34 = vsel %vm157_vm4, %v154_v12, %v156_v32 }
  0xdd   :  { %v187_v35 = vmax.f32 %v186_v33, 1e-08  ;;  %v161_v36 = vsel %vm159_vm5, %v160_v30, %v158_v34 }
  0xde   :  { %v162_v37 = vmax.f32 %v161_v36, 1e-08 }
  0xe0   :  { %v188_v38 = vmul.f32 %v187_v35, %v162_v37 }
  0xe2   :  { %430 = vrcp.f32 %v188_v38 }
  0xec   :  { %v431_v40 = vpop.eup %430 }
  0xed   :  { %v190_v41 = vmul.f32 %v431_v40, %v137_v39 }
  0xef   :  { %v191_v42 = vsel %vm132_vm0, %v190_v41, 0.0 }
  0xf0   :  { %v192_v43 = vrot.slane %v191_v42, 4 }
  0xf2   :  { %v193_v44 = vadd.f32 %v192_v43, %v191_v42 }
  0xf4   :  { %v194_v45 = vrot.slane %v193_v44, 2 }
  0xf6   :  { %v195_v46 = vadd.f32 %v194_v45, %v193_v44 }
  0xf8   :  { %v196_v47 = vrot.slane %v195_v46, 1 }
  0xfa   :  { %v197_v48 = vadd.f32 %v196_v47, %v195_v46 }
  0xfc   :  { %v198_v49 = vmul.f32 0.5, %v197_v48 }
  0xfe   :  { %200 = vst.msk [vmem:[#allocation6] sm:$0x1] %vm107_vm1, %v198_v49 }
 0x104   :  { %s411_s1 = spop %410 }
 0x105   :  { %v231_v51 = vstv %s411_s1  ;;  %v409_v3 = vld [vmem:[#allocation6] ss:$0 sm:$0xff] }
 0x106   :  { %v232_v52 = vadd.f32 %v231_v51, %v205_v50 }
 0x108   :  { %s413_s3 = spop %412  ;;  %234 = vst.msk [vmem:[#allocation2] sm:$0x1] %vm107_vm1, %v232_v52 }
 0x109   :  { %v259_v55 = vstv %s413_s3  ;;  %s415_s4 = spop %414 }
 0x10a   :  { %v260_v57 = vadd.f32 %v259_v55, %v235_v53  ;;  %v286_v58 = vstv %s415_s4  ;;  %s417_s5 = spop %416 }
 0x10b   :  { %v287_v59 = vadd.f32 %v286_v58, %v262_v54  ;;  %v310_v60 = vstv %s417_s5 }
 0x10c   :  { %261 = vst.msk [vmem:[#allocation3] sm:$0x1] %vm107_vm1, %v260_v57  ;;  %v311_v61 = vadd.f32 %v310_v60, %v297_v56 }
 0x10d   :  { %288 = vst.msk [vmem:[#allocation4] sm:$0x1] %vm107_vm1, %v287_v59 }
 0x10e   :  { %312 = vst.msk [vmem:[#allocation5] sm:$0x1] %vm107_vm1, %v311_v61 }
 0x10f   :  { %v405_v62 = vld [vmem:[#allocation2] ss:$0 sm:$0xff] }
 0x110   :  { %326 = vperm.xlu1 %424, %v405_v62  }
 0x113   :  { %v406_v63 = vld [vmem:[#allocation3] ss:$0 sm:$0xff] }
 0x114   :  { %338 = vperm.xlu0 %425, %v406_v63   ;;  %v407_v1 = vld [vmem:[#allocation4] ss:$0 sm:$0xff] }
 0x115   :  { %350 = vperm.xlu1 %424, %v407_v1   ;;  %v408_v2 = vld [vmem:[#allocation5] ss:$0 sm:$0xff] }
 0x119   :  { %362 = vperm.xlu1 %424, %v408_v2  }
 0x11d   :  { %374 = vperm.xlu1 %424, %v409_v3  }
 0x18f   :  { %v327_v5 = vpop.permute.xlu1 %326 }
 0x190   :  { %v329_v8 = vsel %vm318_vm6, %v327_v5, 0.0 }
 0x193   :  { %v339_v7 = vpop.permute.xlu0 %338 }
 0x194   :  { %v351_v6 = vpop.permute.xlu1 %350  ;;  %v341_v9 = vsel %vm330_vm7, %v339_v7, %v329_v8 }
 0x195   :  { %v353_v11 = vsel %vm342_vm8, %v351_v6, %v341_v9 }
 0x198   :  { %v363_v10 = vpop.permute.xlu1 %362 }
 0x199   :  { %v365_v12 = vsel %vm354_vm9, %v363_v10, %v353_v11 }
 0x19c   :  { %v375_v13 = vpop.permute.xlu1 %374 }
 0x19d   :  { %v377_v14 = vsel %vm366_vm10, %v375_v13, %v365_v12 }
 0x19e   :  { %378 = vst [vmem:[#allocation12] sm:$0xff] %v377_v14 }
 0x19f   :  { %490 = shalt.err (!%p487_p10)
}
 0x1a0   :  { %s491_s7 = scalar_lea.hbm %s624_s6, 128 }
 0x1a1   :  { %p492_p11 = scmp.ne.s32.totalorder %s624_s6, %s491_s7  ;;  %p495_p12 = scmp.lt.u32.totalorder %s491_s7, %s624_s6 }
 0x1a3   :  { %p497_p13 = pnand %p495_p12, %p492_p11 }
 0x1a5   :  { %500 = shalt.err (!%p497_p13)
}
 0x1a6   :  { %388 = dma.vmem_to_hbm [thread:$0]  %s386_s27, 128, %s624_s6, [#allocation9]  }
 0x1a7   :  { %505 = dma.done.wait [#allocation9], 128  }
 0x1a8   :  { %506 = vsyncadd [#allocation9], 4294967168 }
 0x1a9   :  { %392 = vsyncpa [#allocation8], 1 }
 0x1aa   :  { %393 = vsyncpa [#allocation11], 1 }
 0x1ab   :  { %394 = vsyncpa [#allocation9], 1 }

</bundles_post_ra>
